<compile_context>
chip_gen: v5e
topology: v5e:2x2
jax: 0.10.0
libtpu: 0.0.40
codegen_flags: <defaults>
</compile_context>

<pallas_src>
import functools

import jax
import jax.numpy as jnp
from jax.experimental import pallas as pl
from jax.experimental.pallas import tpu as pltpu


def _round_up(x, m):
    return (x + m - 1) // m * m


def _discrete_encoder_kernel(idx_ref, tbl_ref, out_ref, *, num_features, v_pad):
    # idx_ref: (tn, F)        int32 -- indices for this row tile
    # tbl_ref: (F*V_pad, H)   f32/bf16 -- folded, zero-padded tables (resident)
    # out_ref: (tn, H)        float32 -- written once per tile
    tn = idx_ref.shape[0]
    idx = idx_ref[...]                                          # (tn, F) i32
    lane = jax.lax.broadcasted_iota(jnp.int32, (tn, v_pad), 1)  # (tn, V_pad)
    tbl_dtype = tbl_ref.dtype

    # Unrolled per-feature accumulate: one-hot_j @ table_j, summed in f32.
    # Static 128-aligned slices of tbl_ref; the VPU compare for feature j+1
    # overlaps the MXU pass for feature j.  No big multi-hot intermediate.
    acc = None
    for j in range(num_features):                               # static, small F
        one_hot = (lane == idx[:, j:j + 1]).astype(tbl_dtype)   # (tn, V_pad)
        part = jnp.dot(one_hot, tbl_ref[j * v_pad:(j + 1) * v_pad, :],
                       preferred_element_type=jnp.float32)      # (tn, H) f32
        acc = part if acc is None else acc + part
    out_ref[...] = acc.astype(out_ref.dtype)


def fold_tables(tables, num_features, dtype=jnp.float32):
    """Fold (MAX_F, V, H) stacked embedding weights -> (F*V_pad, H).

    Hoist this out of the per-step path: call once, reuse the result.
    dtype=jnp.bfloat16 enables the fast bf16 MXU path (one-time rounding).
    """
    max_f, v, h = tables.shape
    assert num_features <= max_f, "more features than embedding tables"
    v_pad = _round_up(v, 128)
    tbl = tables[:num_features].astype(dtype)
    tbl = jnp.pad(tbl, ((0, 0), (0, v_pad - v), (0, 0)))   # pad rows are zero
    return tbl.reshape(num_features * v_pad, h)


@functools.partial(jax.jit, static_argnames=("num_features", "row_tile"))
def discrete_encoder_folded(x, folded_tbl, *, num_features, row_tile=256):
    """Forward pass using a pre-folded table (see fold_tables)."""
    if x.ndim == 1:
        x = x[:, None]
    x = x.astype(jnp.int32)
    n, f = x.shape
    assert f == num_features
    fv, h = folded_tbl.shape
    assert fv % f == 0
    v_pad = fv // f
    itemsize = jnp.dtype(folded_tbl.dtype).itemsize

    # Row tiling: multiple of 8, honoring row_tile; ensure >=2 grid tiles when
    # the batch allows it so the "parallel" axis can shard across TensorCores.
    n8 = _round_up(max(n, 1), 8)
    tn = min(_round_up(row_tile, 8), n8)
    if n8 // tn < 2 and n8 >= 16:
        tn = _round_up(n8 // 2, 8)
    n_pad = _round_up(n8, tn)
    grid = n_pad // tn

    # Pad batch rows with index 0 (valid lookup; rows are sliced off below).
    x_pad = jnp.pad(x, ((0, n_pad - n), (0, 0)))

    # Explicit VMEM budget (lane/sublane-padded), conservatively assuming the
    # default double-buffering of every input/output block.
    h_lanes = _round_up(h, 128)
    f_lanes = _round_up(f, 128)
    vmem_needed = (2 * fv * h_lanes * itemsize        # resident folded table
                   + 2 * tn * f_lanes * 4             # index tiles
                   + 2 * tn * h_lanes * 4             # output tiles
                   + 2 * tn * v_pad * 4)              # one-hot + f32 acc work
    vmem_limit = int(min(max(2 * vmem_needed, 32 * 2**20), 64 * 2**20))
    assert vmem_needed <= vmem_limit, (
        f"folded table + tiles need ~{vmem_needed/2**20:.1f} MiB VMEM "
        f"(> {vmem_limit/2**20:.0f} MiB budget); shrink row_tile or use the "
        "DMA row-gather path for large vocabularies")

    tbl_bytes = fv * h * itemsize
    cost = pl.CostEstimate(
        flops=2 * n_pad * f * v_pad * h,
        transcendentals=0,
        bytes_accessed=tbl_bytes + n_pad * f * 4 + n_pad * h * 4,
    )

    kernel = functools.partial(_discrete_encoder_kernel,
                               num_features=f, v_pad=v_pad)

    out = pl.pallas_call(
        kernel,
        out_shape=jax.ShapeDtypeStruct((n_pad, h), jnp.float32),
        grid_spec=pltpu.PrefetchScalarGridSpec(
            num_scalar_prefetch=0,
            grid=(grid,),
            in_specs=[
                pl.BlockSpec((tn, f), lambda i: (i, 0)),    # row tile of indices
                pl.BlockSpec((fv, h), lambda i: (0, 0)),    # folded table, resident
            ],
            out_specs=pl.BlockSpec((tn, h), lambda i: (i, 0)),
        ),
        compiler_params=pltpu.CompilerParams(
            dimension_semantics=("parallel",),   # row tiles are independent
            vmem_limit_bytes=vmem_limit,
        ),
        cost_estimate=cost,
    )(x_pad, folded_tbl)

    return out[:n]


def discrete_encoder(x, tables, *, row_tile=256, table_dtype=jnp.float32):
    """Pallas equivalent of DiscreteEncoder.forward.

    x:      int array [N, F] (or [N], treated as [N, 1]) of value indices.
    tables: float32 [MAX_F, V, H] stacked nn.Embedding weights.
    returns float32 [N, H].

    For repeated calls, prefer fold_tables(...) once + discrete_encoder_folded.
    """
    f = x.shape[1] if x.ndim > 1 else 1
    folded = fold_tables(tables, f, dtype=table_dtype)
    return discrete_encoder_folded(x, folded, num_features=f, row_tile=row_tile)


def _reference(x, tables):
    if x.ndim == 1:
        x = x[:, None]
    out = jnp.zeros((x.shape[0], tables.shape[-1]), jnp.float32)
    for i in range(x.shape[1]):
        out = out + tables[i][x[:, i]]
    return out


if __name__ == "__main__":
    # Small, deterministic configuration (module defaults shrunk: 10->6 features,
    # 500->128 values, hidden_channels=32).  N=20 exercises the multi-tile grid
    # (>=2 row tiles) + ragged-batch padding + unpadded-H output path.
    MAX_NUM_FEATURES = 6
    MAX_NUM_VALUES = 128
    HIDDEN = 32
    N = 20         # batch of samples (not a multiple of the row tile)
    F = 4          # number of discrete features actually present in x

    key = jax.random.PRNGKey(0)
    k_tbl, k_idx = jax.random.split(key)

    # nn.Embedding.reset_parameters() initializes weights ~ N(0, 1).
    tables = jax.random.normal(
        k_tbl, (MAX_NUM_FEATURES, MAX_NUM_VALUES, HIDDEN), dtype=jnp.float32)
    x = jax.random.randint(k_idx, (N, F), 0, MAX_NUM_VALUES, dtype=jnp.int32)

    # Fold once (hoisted out of the per-call path), then run the kernel.
    folded = fold_tables(tables, F)
    out = discrete_encoder_folded(x, folded, num_features=F)
    jax.block_until_ready(out)

    ref = _reference(x, tables)
    assert out.shape == (N, HIDDEN)
    assert jnp.allclose(out, ref, atol=1e-4, rtol=1e-4), "mismatch vs reference"

    # Also exercise the 1-D input path (x.dim() == 1 in the PyTorch module).
    x1 = x[:, 0]
    out1 = discrete_encoder(x1, tables)
    jax.block_until_ready(out1)
    ref1 = _reference(x1, tables)
    assert out1.shape == (N, HIDDEN)
    assert jnp.allclose(out1, ref1, atol=1e-4, rtol=1e-4), "mismatch (1-D path)"

    print("KERNEL_OK")
</pallas_src>

<mosaic_0001>
module attributes {stable_mosaic.version = 11 : i64} {
  func.func @_discrete_encoder_kernel(%arg0: i32, %arg1: memref<16x4xi32, #tpu.memory_space<vmem>>, %arg2: memref<512x32xf32, #tpu.memory_space<vmem>>, %arg3: memref<16x32xf32, #tpu.memory_space<vmem>>) attributes {dimension_semantics = [#tpu.dimension_semantics<parallel>], iteration_bounds = array<i64: 2>, scalar_prefetch = 0 : i64, scratch_operands = 0 : i64, tpu.core_type = #tpu.core_type<tc>, window_params = [{transform_indices = @transform_0, window_bounds = array<i64: 16, 4>}, {pipeline_mode = #tpu.pipeline_mode<synchronous>, transform_indices = @transform_1, window_bounds = array<i64: 512, 32>}, {transform_indices = @transform_2, window_bounds = array<i64: 16, 32>}]} {
    %c0 = arith.constant 0 : index
    %c0_0 = arith.constant 0 : index
    %0 = vector.load %arg1[%c0, %c0_0] : memref<16x4xi32, #tpu.memory_space<vmem>>, vector<16x4xi32>
    %1 = tpu.iota {dimensions = array<i32: 1>} : vector<16x128xi32>
    %2 = vector.extract_strided_slice %0 {offsets = [0, 0], sizes = [16, 1], strides = [1, 1]} : vector<16x4xi32> to vector<16x1xi32>
    %3 = vector.broadcast %2 : vector<16x1xi32> to vector<16x128xi32>
    %4 = arith.cmpi eq, %1, %3 : vector<16x128xi32>
    %5 = arith.extui %4 : vector<16x128xi1> to vector<16x128xi32>
    %6 = arith.sitofp %5 : vector<16x128xi32> to vector<16x128xf32>
    %c0_1 = arith.constant 0 : index
    %c0_2 = arith.constant 0 : index
    %7 = vector.load %arg2[%c0_1, %c0_2] : memref<512x32xf32, #tpu.memory_space<vmem>>, vector<128x32xf32>
    %cst = arith.constant dense<0.000000e+00> : vector<16x32xf32>
    %8 = tpu.matmul %6, %7, %cst {dimension_numbers = #tpu.dot_dimension_numbers<[1], [0], [0], [1], [0, 0, 1, 1], [], []>} : vector<16x128xf32>, vector<128x32xf32>, vector<16x32xf32> -> vector<16x32xf32>
    %9 = vector.extract_strided_slice %0 {offsets = [0, 1], sizes = [16, 1], strides = [1, 1]} : vector<16x4xi32> to vector<16x1xi32>
    %10 = vector.broadcast %9 : vector<16x1xi32> to vector<16x128xi32>
    %11 = arith.cmpi eq, %1, %10 : vector<16x128xi32>
    %12 = arith.extui %11 : vector<16x128xi1> to vector<16x128xi32>
    %13 = arith.sitofp %12 : vector<16x128xi32> to vector<16x128xf32>
    %c128 = arith.constant 128 : index
    %c0_3 = arith.constant 0 : index
    %14 = vector.load %arg2[%c128, %c0_3] : memref<512x32xf32, #tpu.memory_space<vmem>>, vector<128x32xf32>
    %cst_4 = arith.constant dense<0.000000e+00> : vector<16x32xf32>
    %15 = tpu.matmul %13, %14, %cst_4 {dimension_numbers = #tpu.dot_dimension_numbers<[1], [0], [0], [1], [0, 0, 1, 1], [], []>} : vector<16x128xf32>, vector<128x32xf32>, vector<16x32xf32> -> vector<16x32xf32>
    %16 = arith.addf %8, %15 : vector<16x32xf32>
    %17 = vector.extract_strided_slice %0 {offsets = [0, 2], sizes = [16, 1], strides = [1, 1]} : vector<16x4xi32> to vector<16x1xi32>
    %18 = vector.broadcast %17 : vector<16x1xi32> to vector<16x128xi32>
    %19 = arith.cmpi eq, %1, %18 : vector<16x128xi32>
    %20 = arith.extui %19 : vector<16x128xi1> to vector<16x128xi32>
    %21 = arith.sitofp %20 : vector<16x128xi32> to vector<16x128xf32>
    %c256 = arith.constant 256 : index
    %c0_5 = arith.constant 0 : index
    %22 = vector.load %arg2[%c256, %c0_5] : memref<512x32xf32, #tpu.memory_space<vmem>>, vector<128x32xf32>
    %cst_6 = arith.constant dense<0.000000e+00> : vector<16x32xf32>
    %23 = tpu.matmul %21, %22, %cst_6 {dimension_numbers = #tpu.dot_dimension_numbers<[1], [0], [0], [1], [0, 0, 1, 1], [], []>} : vector<16x128xf32>, vector<128x32xf32>, vector<16x32xf32> -> vector<16x32xf32>
    %24 = arith.addf %16, %23 : vector<16x32xf32>
    %25 = vector.extract_strided_slice %0 {offsets = [0, 3], sizes = [16, 1], strides = [1, 1]} : vector<16x4xi32> to vector<16x1xi32>
    %26 = vector.broadcast %25 : vector<16x1xi32> to vector<16x128xi32>
    %27 = arith.cmpi eq, %1, %26 : vector<16x128xi32>
    %28 = arith.extui %27 : vector<16x128xi1> to vector<16x128xi32>
    %29 = arith.sitofp %28 : vector<16x128xi32> to vector<16x128xf32>
    %c384 = arith.constant 384 : index
    %c0_7 = arith.constant 0 : index
    %30 = vector.load %arg2[%c384, %c0_7] : memref<512x32xf32, #tpu.memory_space<vmem>>, vector<128x32xf32>
    %cst_8 = arith.constant dense<0.000000e+00> : vector<16x32xf32>
    %31 = tpu.matmul %29, %30, %cst_8 {dimension_numbers = #tpu.dot_dimension_numbers<[1], [0], [0], [1], [0, 0, 1, 1], [], []>} : vector<16x128xf32>, vector<128x32xf32>, vector<16x32xf32> -> vector<16x32xf32>
    %32 = arith.addf %24, %31 : vector<16x32xf32>
    %c0_9 = arith.constant 0 : index
    %c0_10 = arith.constant 0 : index
    %33 = vector.load %arg3[%c0_9, %c0_10] : memref<16x32xf32, #tpu.memory_space<vmem>>, vector<16x32xf32>
    tpu.vector_store %arg3[%c0_9, %c0_10], %32 {strides = array<i32>} : memref<16x32xf32, #tpu.memory_space<vmem>>, vector<16x32xf32>,
    return
  }
  func.func @transform_0(%arg0: i32) -> (i32, i32) {
    %c0_i32 = arith.constant 0 : i32
    %c0_i32_0 = arith.constant 0 : i32
    return %arg0, %c0_i32 : i32, i32
  }
  func.func @transform_1(%arg0: i32) -> (i32, i32) {
    %c0_i32 = arith.constant 0 : i32
    %c0_i32_0 = arith.constant 0 : i32
    %c0_i32_1 = arith.constant 0 : i32
    return %c0_i32, %c0_i32_0 : i32, i32
  }
  func.func @transform_2(%arg0: i32) -> (i32, i32) {
    %c0_i32 = arith.constant 0 : i32
    %c0_i32_0 = arith.constant 0 : i32
    return %arg0, %c0_i32 : i32, i32
  }
}

</mosaic_0001>

<bundles_post_ra>
// kernel: discrete_encoder_folded.1
= control target key start
LH: loop header
LB: loop body
LE: loop exit
PB: predicated region body
PF: predicated region fallthrough
CT: control target
= control target key end

     0   :  { %s494_s9 = smov 0   ;;  %s718_s0 = inlined_call_operand.vmem [shape: s32[32,4], index: 0, kind: input, shape index: {}]   ;;  %s719_s1 = inlined_call_operand.vmem [shape: f32[512,32], index: 1, kind: input, shape index: {}]   ;;  %s720_s2 = inlined_call_operand.vmem [shape: f32[32,32], index: 2, kind: output, shape index: {}]  }
   0x1 LB: > { %s418_s10 = sadd.s32 4294967295, %s472_s9   ;;  %p422_p0 = scmp.ge.s32.totalorder %s472_s9, 1  ;;  %s472_s9 = sphi %s494_s9, %s12_s9  }
   0x2   : > { %p113_p1 = scmp.lt.s32.totalorder %s472_s9, 3 }
   0x4   : > { %p114_p2 = pnand %p422_p0, %p113_p1 }
   0x5   : > { %s423_s11 = sshll.u32 (!%p114_p2), %s418_s10, 1 }
   0x6   : > { %117 = sbr.rel (%p114_p2) target bundleno = 287 (0x11f), region = 28  ;;  %p136_p3 = scmp.lt.s32.totalorder (!%p114_p2), %s423_s11, 3 }
   0xb   : > { %v280_v0 = vld [vmem:[%s719_s1 + $0x178] sm:$0xff]  ;;  %v474_v1 = vmov 2   ;;  %v475_v2 = vmov 0   ;;  %v279_v4 = vld [vmem:[%s719_s1 + $0x170] sm:$0xff]  ;;  %s722_s11 = smov (!%p136_p3, %s423_s11), 3  ;;  %v278_v6 = vld [vmem:[%s719_s1 + $0x168] sm:$0xff] }
   0xc   : > { %458 = vset.pattern.permute.xlu0 %v474_v1  ;;  %460 = vset.pattern.permute.xlu1 %v475_v2  ;;  %v178_v3 = vld [vmem:[%s719_s1 + $0x78] sm:$0xff]  ;;  %v177_v5 = vld [vmem:[%s719_s1 + $0x70] sm:$0xff]  ;;  %v176_v8 = vld [vmem:[%s719_s1 + $0x68] sm:$0xff]  ;;  %s424_s28 = sshll.u32 %s722_s11, 3  ;;  %v476_v28 = vmov 1   ;;  %v477_v29 = vmov 3  }
   0xd   : > { %462 = vset.pattern.permute.xlu2 %v474_v1  ;;  %281 = vmatpush.msra.mxu2 %v280_v0  ;;  %v206_v7 = vld [vmem:[%s719_s1 + $0xf8] sm:$0xff]  ;;  %v205_v10 = vld [vmem:[%s719_s1 + $0xf0] sm:$0xff]  ;;  %s139_s7 = scalar_lea.vmem %s718_s0, %s424_s28  ;;  %v277_v12 = vld [vmem:[%s719_s1 + $0x160] sm:$0xff]  ;;  %s145_s20 = scalar_lea.vmem %s720_s2, %s424_s28  ;;  %vm359_vm8 = vcmask 261120  }
   0xe   : > { %230 = vmatpush.msra.mxu1 %v178_v3  ;;  %207 = vmatpush.msra.mxu0 %v206_v7  ;;  %v333_v9 = vld [vmem:[%s719_s1 + $0x1f8] sm:$0xff]  ;;  %v332_v11 = vld [vmem:[%s719_s1 + $0x1f0] sm:$0xff]  ;;  %v147_v13 = vld [vmem:[%s139_s7] sm:$0xff] }
   0xf   : > { %282 = vmatpush.msra.mxu2 %v279_v4  ;;  %334 = vmatpush.msra.mxu3 %v333_v9  ;;  %v175_v14 = vld [vmem:[%s719_s1 + $0x60] sm:$0xff]  ;;  %v204_v15 = vld [vmem:[%s719_s1 + $0xe8] sm:$0xff]  ;;  %v276_v17 = vld [vmem:[%s719_s1 + $0x158] sm:$0xff] }
  0x10   : > { %231 = vmatpush.msra.mxu1 %v177_v5  ;;  %208 = vmatpush.msra.mxu0 %v205_v10  ;;  %v550_v16 = vld [vmem:[%s139_s7 + $0x8] sm:$0xff]  ;;  %v174_v19 = vld [vmem:[%s719_s1 + $0x58] sm:$0xff]  ;;  %v203_v20 = vld [vmem:[%s719_s1 + $0xe0] sm:$0xff] }
  0x11   : > { %283 = vmatpush.msra.mxu2 %v278_v6  ;;  %335 = vmatpush.msra.mxu3 %v332_v11  ;;  %v331_v18 = vld [vmem:[%s719_s1 + $0x1e8] sm:$0xff]  ;;  %v275_v21 = vld [vmem:[%s719_s1 + $0x150] sm:$0xff]  ;;  %v330_v22 = vld [vmem:[%s719_s1 + $0x1e0] sm:$0xff]  ;;  %v149_v6 = vlaneseq  ;;  %v478_v11 = vmov 1.0  }
  0x12   : > { %232 = vmatpush.msra.mxu1 %v176_v8  ;;  %152 = vperm.xlu1 %460, %v147_v13   ;;  %v173_v23 = vld [vmem:[%s719_s1 + $0x50] sm:$0xff]  ;;  %v202_v24 = vld [vmem:[%s719_s1 + $0xd8] sm:$0xff]  ;;  %v274_v25 = vld [vmem:[%s719_s1 + $0x148] sm:$0xff] }
  0x13   : > { %254 = vperm.xlu0 %458, %v147_v13   ;;  %257 = vperm.xlu2 %462, %v550_v16   ;;  %v329_v26 = vld [vmem:[%s719_s1 + $0x1d8] sm:$0xff]  ;;  %v172_v27 = vld [vmem:[%s719_s1 + $0x48] sm:$0xff]  ;;  %v273_v30 = vld [vmem:[%s719_s1 + $0x140] sm:$0xff]  ;;  %v150_v8 = vand.u32 127, %v149_v6 }
  0x14   : > { %284 = vmatpush.msra.mxu2 %v277_v12  ;;  %233 = vmatpush.msra.mxu1 %v175_v14  ;;  %v171_v31 = vld [vmem:[%s719_s1 + $0x40] sm:$0xff]  ;;  %v201_v32 = vld [vmem:[%s719_s1 + $0xd0] sm:$0xff]  ;;  %v272_v33 = vld [vmem:[%s719_s1 + $0x138] sm:$0xff] }
  0x15   : > { %209 = vmatpush.msra.mxu0 %v204_v15  ;;  %336 = vmatpush.msra.mxu3 %v331_v18  ;;  %v328_v34 = vld [vmem:[%s719_s1 + $0x1d0] sm:$0xff]  ;;  %v170_v35 = vld [vmem:[%s719_s1 + $0x38] sm:$0xff]  ;;  %v200_v36 = vld [vmem:[%s719_s1 + $0xc8] sm:$0xff] }
  0x16   : > { %285 = vmatpush.msra.mxu2 %v276_v17  ;;  %234 = vmatpush.msra.mxu1 %v174_v19  ;;  %v271_v37 = vld [vmem:[%s719_s1 + $0x130] sm:$0xff]  ;;  %v327_v38 = vld [vmem:[%s719_s1 + $0x1c8] sm:$0xff]  ;;  %v199_v40 = vld [vmem:[%s719_s1 + $0xc0] sm:$0xff] }
  0x17   : > { %210 = vmatpush.msra.mxu0 %v203_v20  ;;  %337 = vmatpush.msra.mxu3 %v330_v22  ;;  %v169_v39 = vld [vmem:[%s719_s1 + $0x30] sm:$0xff]  ;;  %v270_v41 = vld [vmem:[%s719_s1 + $0x128] sm:$0xff]  ;;  %v269_v43 = vld [vmem:[%s719_s1 + $0x120] sm:$0xff] }
  0x18   : > { %286 = vmatpush.msra.mxu2 %v275_v21  ;;  %235 = vmatpush.msra.mxu1 %v173_v23  ;;  %v168_v42 = vld [vmem:[%s719_s1 + $0x28] sm:$0xff]  ;;  %v167_v44 = vld [vmem:[%s719_s1 + $0x20] sm:$0xff]  ;;  %v268_v46 = vld [vmem:[%s719_s1 + $0x118] sm:$0xff] }
  0x19   : > { %211 = vmatpush.msra.mxu0 %v202_v24  ;;  %338 = vmatpush.msra.mxu3 %v329_v26  ;;  %v326_v45 = vld [vmem:[%s719_s1 + $0x1c0] sm:$0xff]  ;;  %v198_v47 = vld [vmem:[%s719_s1 + $0xb8] sm:$0xff]  ;;  %v267_v50 = vld [vmem:[%s719_s1 + $0x110] sm:$0xff] }
  0x1a   : > { %287 = vmatpush.msra.mxu2 %v274_v25  ;;  %461 = vset.pattern.permute.xlu1 %v476_v28  ;;  %v166_v48 = vld [vmem:[%s719_s1 + $0x18] sm:$0xff]  ;;  %v197_v51 = vld [vmem:[%s719_s1 + $0xb0] sm:$0xff]  ;;  %v266_v54 = vld [vmem:[%s719_s1 + $0x108] sm:$0xff] }
  0x1b   : > { %459 = vset.pattern.permute.xlu0 %v477_v29  ;;  %180 = vperm.xlu1 %461, %v147_v13   ;;  %v325_v49 = vld [vmem:[%s719_s1 + $0x1b8] sm:$0xff]  ;;  %v165_v52 = vld [vmem:[%s719_s1 + $0x10] sm:$0xff]  ;;  %v196_v55 = vld [vmem:[%s719_s1 + $0xa8] sm:$0xff] }
  0x1c   : > { %307 = vperm.xlu0 %459, %v147_v13   ;;  %463 = vset.pattern.permute.xlu2 %v477_v29  ;;  %v324_v53 = vld [vmem:[%s719_s1 + $0x1b0] sm:$0xff]  ;;  %v164_v56 = vld [vmem:[%s719_s1 + $0x8] sm:$0xff]  ;;  %v265_v58 = vld [vmem:[%s719_s1 + $0x100] sm:$0xff] }
  0x1d   : > { %236 = vmatpush.msra.mxu1 %v172_v27  ;;  %310 = vperm.xlu2 %463, %v550_v16   ;;  %v323_v57 = vld [vmem:[%s719_s1 + $0x1a8] sm:$0xff]  ;;  %v195_v59 = vld [vmem:[%s719_s1 + $0xa0] sm:$0xff]  ;;  %v194_v62 = vld [vmem:[%s719_s1 + $0x98] sm:$0xff] }
  0x1e   : > { %288 = vmatpush.msra.mxu2 %v273_v30  ;;  %212 = vmatpush.msra.mxu0 %v201_v32  ;;  %v163_v60 = vld [vmem:[%s719_s1] sm:$0xff]  ;;  %v321_v63 = vld [vmem:[%s719_s1 + $0x198] sm:$0xff]  ;;  %v193_v0 = vld [vmem:[%s719_s1 + $0x90] sm:$0xff] }
  0x1f   : > { %237 = vmatpush.msra.mxu1 %v171_v31  ;;  %339 = vmatpush.msra.mxu3 %v328_v34  ;;  %v322_v61 = vld [vmem:[%s719_s1 + $0x1a0] sm:$0xff]  ;;  %v320_v1 = vld [vmem:[%s719_s1 + $0x190] sm:$0xff]  ;;  %v319_v3 = vld [vmem:[%s719_s1 + $0x188] sm:$0xff] }
  0x20   : > { %289 = vmatpush.msra.mxu2 %v272_v33  ;;  %213 = vmatpush.msra.mxu0 %v200_v36  ;;  %v191_v4 = vld [vmem:[%s719_s1 + $0x80] sm:$0xff] }
  0x21   : > { %238 = vmatpush.msra.mxu1 %v170_v35  ;;  %340 = vmatpush.msra.mxu3 %v327_v38  ;;  %v318_v5 = vld [vmem:[%s719_s1 + $0x180] sm:$0xff] }
  0x22   : > { %290 = vmatpush.msra.mxu2 %v271_v37  ;;  %214 = vmatpush.msra.mxu0 %v199_v40 }
  0x23   : > { %239 = vmatpush.msra.mxu1 %v169_v39  ;;  %464 = vset.pattern.permute.xlu1 %v475_v2  ;;  %v192_v2 = vld [vmem:[%s719_s1 + $0x88] sm:$0xff] }
  0x24   : > { %291 = vmatpush.msra.mxu2 %v270_v41  ;;  %155 = vperm.xlu1 %464, %v550_v16  }
  0x25   : > { %240 = vmatpush.msra.mxu1 %v168_v42  ;;  %465 = vset.pattern.permute.xlu2 %v476_v28 }
  0x26   : > { %292 = vmatpush.msra.mxu2 %v269_v43  ;;  %183 = vperm.xlu2 %465, %v550_v16  }
  0x27   : > { %241 = vmatpush.msra.mxu1 %v167_v44  ;;  %341 = vmatpush.msra.mxu3 %v326_v45 }
  0x28   : > { %293 = vmatpush.msra.mxu2 %v268_v46  ;;  %215 = vmatpush.msra.mxu0 %v198_v47 }
  0x29   : > { %242 = vmatpush.msra.mxu1 %v166_v48  ;;  %342 = vmatpush.msra.mxu3 %v325_v49 }
  0x2a   : > { %294 = vmatpush.msra.mxu2 %v267_v50  ;;  %216 = vmatpush.msra.mxu0 %v197_v51 }
  0x2b   : > { %243 = vmatpush.msra.mxu1 %v165_v52  ;;  %343 = vmatpush.msra.mxu3 %v324_v53 }
  0x2c   : > { %295 = vmatpush.msra.mxu2 %v266_v54  ;;  %217 = vmatpush.msra.mxu0 %v196_v55 }
  0x2d   : > { %244 = vmatpush.msra.mxu1 %v164_v56  ;;  %344 = vmatpush.msra.mxu3 %v323_v57 }
  0x2e   : > { %296 = vmatpush.msra.mxu2 %v265_v58  ;;  %218 = vmatpush.msra.mxu0 %v195_v59 }
  0x2f   : > { %245 = vmatpush.msra.mxu1 %v163_v60  ;;  %345 = vmatpush.msra.mxu3 %v322_v61 }
  0x30   : > { %219 = vmatpush.msra.mxu0 %v194_v62 }
  0x31   : > { %346 = vmatpush.msra.mxu3 %v321_v63 }
  0x32   : > { %220 = vmatpush.msra.mxu0 %v193_v0 }
  0x33   : > { %347 = vmatpush.msra.mxu3 %v320_v1 }
  0x34   : > { %221 = vmatpush.msra.mxu0 %v192_v2 }
  0x35   : > { %348 = vmatpush.msra.mxu3 %v319_v3 }
  0x36   : > { %222 = vmatpush.msra.mxu0 %v191_v4 }
  0x37   : > { %349 = vmatpush.msra.mxu3 %v318_v5 }
  0x6d   : > { %v258_v7 = vpop.permute.xlu2 %257 }
  0x6e   : > { %vm260_vm2 = vcmp.eq.s32.totalorder %v150_v8, %v258_v7 }
  0x77   : > { %v311_v12 = vpop.permute.xlu2 %310 }
  0x78   : > { %vm313_vm6 = vcmp.eq.s32.totalorder %v150_v8, %v311_v12 }
  0x80   : > { %v184_v15 = vpop.permute.xlu2 %183 }
  0x81   : > { %vm186_vm5 = vcmp.eq.s32.totalorder %v150_v8, %v184_v15 }
  0x84   : > { %v153_v10 = vpop.permute.xlu1 %152 }
  0x85   : > { %v255_v9 = vpop.permute.xlu0 %254  ;;  %vm157_vm1 = vcmp.eq.s32.totalorder %v150_v8, %v153_v10 }
  0x86   : > { %vm259_vm0 = vcmp.eq.s32.totalorder %v150_v8, %v255_v9  ;;  %433 = vmatmul.msk.f32.vlgmr.msra.gmra.mxu1 %vm157_vm1, %v478_v11 }
  0x87   : > { %437 = vmatmul.msk.f32.vlgmr.msra.gmra.mxu2 %vm259_vm0, %v478_v11 }
  0x8d   : > { %v181_v13 = vpop.permute.xlu1 %180 }
  0x8e   : > { %v308_v14 = vpop.permute.xlu0 %307  ;;  %vm185_vm3 = vcmp.eq.s32.totalorder %v150_v8, %v181_v13 }
  0x8f   : > { %vm312_vm4 = vcmp.eq.s32.totalorder %v150_v8, %v308_v14  ;;  %438 = vmatmul.msk.f32.gmra.mxu2 %vm260_vm2, %v478_v11  ;;  %431 = vmatmul.msk.f32.vlgmr.msra.gmra.mxu0 %vm185_vm3, %v478_v11 }
  0x90   : > { %441 = vmatmul.msk.f32.vlgmr.msra.gmra.mxu3 %vm312_vm4, %v478_v11 }
  0x96   : > { %v156_v16 = vpop.permute.xlu1 %155 }
  0x97   : > { %vm158_vm7 = vcmp.eq.s32.totalorder %v150_v8, %v156_v16  ;;  %432 = vmatmul.msk.f32.gmra.mxu0 %vm186_vm5, %v478_v11 }
  0x98   : > { %442 = vmatmul.msk.f32.gmra.mxu3 %vm313_vm6, %v478_v11  ;;  %434 = vmatmul.msk.f32.gmra.mxu1 %vm158_vm7, %v478_v11 }
 0x103   : > { %v247_v17 = vpop.f32.mrf.mxu1 }
 0x10a   : > { %v298_v19 = vpop.f32.mrf.mxu2 }
 0x10c   : > { %v224_v18 = vpop.f32.mrf.mxu0 }
 0x10d   : > { %v248_v20 = vadd.f32 %v247_v17, %v224_v18 }
 0x10f   : > { %v304_v21 = vadd.f32 %v298_v19, %v248_v20 }
 0x112   : > { %v301_v27 = vpop.f32.mrf.mxu2 }
 0x113   : > { %v351_v22 = vpop.f32.mrf.mxu3 }
 0x114   : > { %v357_v23 = vadd.f32 %v351_v22, %v304_v21  ;;  %v227_v24 = vpop.f32.mrf.mxu0 }
 0x115   : > { %v250_v25 = vpop.f32.mrf.mxu1 }
 0x116   : > { %360 = vst.msk [vmem:[%s145_s20] sm:$0xff] %vm359_vm8, %v357_v23  ;;  %v251_v26 = vadd.f32 %v250_v25, %v227_v24 }
 0x118   : > { %v305_v28 = vadd.f32 %v301_v27, %v251_v26 }
 0x11b   : > { %v354_v29 = vpop.f32.mrf.mxu3 }
 0x11c   : > { %v358_v30 = vadd.f32 %v354_v29, %v305_v28 }
 0x11e   : > { %361 = vst.msk [vmem:[%s145_s20 + $0x8] sm:$0xff] %vm359_vm8, %v358_v30 }
 0x11f PF: > { %s12_s9 = sadd.s32 1, %s472_s9  }
 0x120   : > { %p9_p4 = scmp.ge.s32.totalorder %s12_s9, 4  }
 0x122   :  { %11 = sbr.rel (!%p9_p4) target bundleno = 1 (0x1), region = 58 }

</bundles_post_ra>
